<compile_context>
chip_gen: v6e
topology: v6e:2x2x1
jax: 0.10.0
libtpu: 0.0.40
codegen_flags: <defaults>
</compile_context>

<pallas_src>
import numpy as np
import jax
import jax.numpy as jnp
from jax.experimental import pallas as pl
from jax.experimental.pallas import tpu as pltpu

QUBITS = 4                      # kernel_size ** 2
DIM = 2 ** QUBITS               # 16
TN_MAX = 4096                   # patch tile upper bound (lane axis); a few MiB of VMEM max


def _cdiv(a, b):
    return -(-a // b)


def _round_up(v, m):
    return _cdiv(v, m) * m


# ------------------------- constant construction (numpy glue) -------------------------
_H = np.array([[1.0, 1.0], [1.0, -1.0]], dtype=np.complex128) / np.sqrt(2.0)
_X = np.array([[0.0, 1.0], [1.0, 0.0]], dtype=np.complex128)
_I = np.eye(2, dtype=np.complex128)


def _bin_list(num, length):
    return [int(b) for b in format(num, "0{}b".format(length))]


def _get_cnot(control, target, qubits):
    swap = True
    if control > target:
        swap = False
        control, target = target, control
    diff = target - control
    if diff > 1:
        scaler = np.eye(2 ** (diff - 1), dtype=np.complex128)
        upper = np.kron(scaler, _I)
        lower = np.kron(scaler, _X)
    else:
        upper, lower = _I, _X
    unitary = (np.kron(np.array([[1, 0], [0, 0]], dtype=np.complex128), upper)
               + np.kron(np.array([[0, 0], [0, 1]], dtype=np.complex128), lower))
    if swap:
        swap_matrix = _H
        for _ in range(1, diff + 1):
            swap_matrix = np.kron(swap_matrix, _H)
        unitary = swap_matrix @ unitary @ swap_matrix
    if qubits > diff + 1:
        bits_before = int(control - 1)
        bits_after = int(qubits - target)
        unitary = np.kron(np.eye(2 ** bits_after, dtype=np.complex128),
                          np.kron(unitary, np.eye(2 ** bits_before, dtype=np.complex128)))
    return unitary


def _get_cnot_ring(qubits):
    unitary = _get_cnot(1, 2, qubits)
    for i in range(2, qubits):
        unitary = _get_cnot(i, i + 1, qubits) @ unitary
    unitary = _get_cnot(qubits, 1, qubits) @ unitary
    return unitary


def _get_hadamard(qubits):
    u = _H
    for _ in range(1, qubits):
        u = np.kron(u, _H)
    return u


def _rx_unitary(weight):
    q = QUBITS
    half = q // 2
    shift = np.kron(np.ones(q), (np.pi / 2) * np.eye(half)).astype(np.complex128)
    signer = np.kron(np.ones(q), np.array([[1, -1j], [-1j, 1]], dtype=np.complex128))
    pattern = np.ones((half, half), dtype=np.complex128)
    scale = np.kron((weight / 2).astype(np.complex128), pattern)
    w_scale = signer * np.sin(scale + shift)
    unitary = w_scale[:, -2:]
    for i in range(1, q):
        idx = -2 * i
        unitary = np.kron(unitary, w_scale[:, idx - 2:idx])
    return unitary


def _rzz_diag(control, target):
    c, t = int(min(control, target)), int(max(control, target))
    diff = t - c
    upper_diff = 4 - t
    core = np.array([-1j, 1j, 1j, -1j], dtype=np.complex128)
    operator = np.kron(core, np.ones(2 ** (c - 1)))
    if diff > 1:
        half = len(operator) // 2
        op_upper, op_lower = operator[:half], operator[half:]
        scaler = np.ones(2 ** (diff - 1))
        operator = (np.kron(np.array([1, 0]), np.kron(scaler, op_upper))
                    + np.kron(np.array([0, 1]), np.kron(scaler, op_lower)))
    if upper_diff > 0:
        operator = np.kron(np.ones(2 ** upper_diff), operator)
    return operator.astype(np.complex128)


def build_constants(rx_weight):
    pairs = [(i, j) for i in range(1, QUBITS + 1) for j in range(i + 1, QUBITS + 1)]
    rzz_diags = np.stack([_rzz_diag(c, t) for (c, t) in pairs])           # (6, 16), entries +-1j
    bin_arr = np.array([_bin_list(x, QUBITS) for x in range(DIM)])
    rz_static = -np.ones((DIM, QUBITS)) + 2.0 * np.flip(np.flip(bin_arr, -1), -2)
    states = np.array([_bin_list(x, QUBITS) for x in range(DIM)], dtype=np.float64)
    cnot_u = _get_cnot_ring(QUBITS)
    had_u = _get_hadamard(QUBITS)
    rx_u = _rx_unitary(np.asarray(rx_weight, dtype=np.float64))

    # Sanity-check the algebraic folding: Im(rzz_{(a,b)}[m]) == -z_{a-1}[m] * z_{b-1}[m]
    for k_idx, (a, b) in enumerate(pairs):
        np.testing.assert_allclose(rzz_diags[k_idx].imag,
                                   -(rz_static[:, a - 1] * rz_static[:, b - 1]))

    # Folded kernel constants (feature-major layout).
    a_mat = (cnot_u @ rx_u) * had_u[:, 0].real[None, :]          # (16,16) complex, H|0..0> folded
    mc = np.concatenate([a_mat.real, a_mat.imag], axis=0)        # (32,16): [y_re;y_im] = Mc@cos + Ms@sin
    ms = np.concatenate([-a_mat.imag, a_mat.real], axis=0)       # (32,16)

    return dict(
        zhalf=(0.5 * rz_static).astype(np.float32),              # (16, 4), entries +-0.5
        mc=mc.astype(np.float32),
        ms=ms.astype(np.float32),
        stt=states.T.astype(np.float32),                         # (4, 16) bit-state matrix, transposed
        # full complex matrices, used only by the numpy reference check
        rzz_diags=rzz_diags, rz_static=rz_static, cnot_u=cnot_u, had_u=had_u,
        rx_u=rx_u, states64=states)


# ----------------------------------- Pallas kernel -----------------------------------
def _make_kernel(bf16_trans):
    def kernel(p_ref, zh_ref, mc_ref, ms_ref, st_ref, o_ref):
        p = p_ref[...]                                                      # (4, TN) patches on lanes
        # t[m, n] = 0.5 * sum_q z_q[m] * x_q[n]   (Z entries +-1; 0.5 folded into constant)
        t = jnp.dot(zh_ref[...], p, preferred_element_type=jnp.float32)     # (16, TN)
        s2q = 0.25 * jnp.sum(p * p, axis=0, keepdims=True)                  # (1, TN)
        # phi = 0.25*sum_q x_q^2 - 0.25*(Zx)^2 - 0.5*(Zx) = s2q - t*(t+1)
        phi = s2q - t * (t + 1.0)                                           # (16, TN)
        if bf16_trans:
            phi = phi.astype(jnp.bfloat16)                                  # bf16 EUP on v6e/v7x
        cos_p = jnp.cos(phi)
        sin_p = jnp.sin(phi)
        # [y_re; y_im] = Mc @ cos(phi) + Ms @ sin(phi)   (two accumulating MXU pushes, no concat)
        w = (jnp.dot(mc_ref[...], cos_p, preferred_element_type=jnp.float32)
             + jnp.dot(ms_ref[...], sin_p, preferred_element_type=jnp.float32))  # (32, TN)
        w_re = w[:DIM, :]
        w_im = w[DIM:, :]
        probs = w_re * w_re + w_im * w_im                                   # (16, TN)  |amplitude|^2
        o_ref[...] = jnp.dot(st_ref[...], probs,
                             preferred_element_type=jnp.float32)            # (4, TN) qubit expectations
    return kernel


def _choose_tile(n):
    # Balanced tiles (no mostly-padding tail) and >= 2 grid steps when n allows,
    # so v7x's two TensorCores both get work; neutral on single-TC v5e/v6e.
    min_steps = 2 if n > 128 else 1
    steps = max(_cdiv(n, TN_MAX), min_steps)
    tn = _round_up(_cdiv(n, steps), 128)
    n_pad = _round_up(n, tn)
    return tn, n_pad


def _bf16_transcendentals_supported():
    # bf16 VPU/EUP exists on v6e/v7x; v5e (and older/unknown parts) keep f32.
    try:
        kind = jax.devices()[0].device_kind.lower()
    except Exception:
        return False
    return ("v6" in kind) or ("v7" in kind)


def quantum_conv2d(x, kconsts, kernel_size=2, stride=2, bf16_trans=None):
    assert stride == kernel_size, "fold-back in the module assumes non-overlapping patches"
    b, c, s, s_ = x.shape
    assert c == 1 and s == s_
    k = kernel_size
    ho = s // k
    n = b * ho * ho
    if bf16_trans is None:
        bf16_trans = _bf16_transcendentals_supported()

    # nn.Unfold((k,k), stride=k) -> permute(0,2,1) -> flatten, TRANSPOSED to feature-major
    # (QUBITS, N): qubit q = kr*k + kc on sublanes, patches on lanes.
    pt = x.reshape(b, ho, k, ho, k)
    pt = jnp.transpose(pt, (2, 4, 0, 1, 3)).reshape(k * k, n).astype(jnp.float32)

    tn, n_pad = _choose_tile(n)
    if n_pad != n:
        # Padded (zero) columns give phi=0 -> nonzero garbage outputs; sliced off below.
        pt = jnp.pad(pt, ((0, 0), (0, n_pad - n)))

    const_dt = jnp.bfloat16 if bf16_trans else jnp.float32
    mc = jnp.asarray(kconsts["mc"], dtype=const_dt)   # hand the MXU native bf16 operands
    ms = jnp.asarray(kconsts["ms"], dtype=const_dt)

    out = pl.pallas_call(
        _make_kernel(bf16_trans),
        out_shape=jax.ShapeDtypeStruct((QUBITS, n_pad), jnp.float32),
        grid_spec=pltpu.PrefetchScalarGridSpec(
            num_scalar_prefetch=0,
            grid=(n_pad // tn,),
            in_specs=[
                pl.BlockSpec((QUBITS, tn), lambda i: (0, i)),           # patches (lane-dense)
                pl.BlockSpec((DIM, QUBITS), lambda i: (0, 0)),          # 0.5 * Z sign matrix (16, 4)
                pl.BlockSpec((2 * DIM, DIM), lambda i: (0, 0)),         # Mc (32, 16)
                pl.BlockSpec((2 * DIM, DIM), lambda i: (0, 0)),         # Ms (32, 16)
                pl.BlockSpec((QUBITS, DIM), lambda i: (0, 0)),          # states^T (4, 16)
            ],
            out_specs=pl.BlockSpec((QUBITS, tn), lambda i: (0, i)),     # lane-dense output stores
        ),
        compiler_params=pltpu.CompilerParams(dimension_semantics=("parallel",)),
    )(pt, jnp.asarray(kconsts["zhalf"]), mc, ms, jnp.asarray(kconsts["stt"]))

    out = out[:, :n].reshape(QUBITS, b, ho, ho)
    return jnp.transpose(out, (1, 0, 2, 3))                              # NCHW: (B, qubits, ho, ho)


# ------------------- numpy reference (literal port of torch forward) -------------------
def reference_forward(x_np, consts, kernel_size=2):
    b, _, s, _ = x_np.shape
    k = kernel_size
    ho = s // k
    patches = x_np.reshape(b, ho, k, ho, k).transpose(0, 1, 3, 2, 4).reshape(-1, k * k)
    xc = patches.astype(np.complex128)
    n = xc.shape[0]
    eye = np.eye(DIM, dtype=np.complex128)
    upper_triag = [1, 2, 3, 6, 7, 11]
    rot_mul = (xc[:, :, None] * xc[:, None, :]).reshape(n, QUBITS * QUBITS)[:, upper_triag]
    tmp = np.exp(rot_mul[:, :, None] / 2.0 * consts["rzz_diags"][None])
    ops = tmp[:, :, :, None] * eye[None, None]
    u_rzz = ops[:, -1]
    for i in range(ops.shape[1] - 1):
        u_rzz = u_rzz @ ops[:, ops.shape[1] - 2 - i]
    rot = xc / (2.0 * 1j)
    u_rz = np.exp(np.sum(consts["rz_static"][None] * rot[:, None, :], axis=-1))
    u_rz = u_rz[:, :, None] * eye[None]
    d = u_rzz @ u_rz
    y = consts["rx_u"][None] @ d
    y = consts["cnot_u"][None] @ y
    y = y @ consts["had_u"][None]
    probs = np.abs(y[:, :, 0]) ** 2
    out = probs @ consts["states64"]
    return out.reshape(b, ho, ho, QUBITS).transpose(0, 3, 1, 2)


if __name__ == "__main__":
    key = jax.random.PRNGKey(0)
    kx, kw = jax.random.split(key)
    # B=2, C=1, size=32, kernel_size=2, stride=2  (qubits=4, 256 patches/image -> 2 grid steps)
    x = jax.random.uniform(kx, (2, 1, 32, 32), dtype=jnp.float32)
    rx_weight = jax.random.normal(kw, (QUBITS,), dtype=jnp.float32)   # RX learnable weight

    consts = build_constants(np.asarray(rx_weight))
    kconsts = {name: jnp.asarray(consts[name]) for name in ("zhalf", "mc", "ms", "stt")}

    bf16 = _bf16_transcendentals_supported()
    out = quantum_conv2d(x, kconsts, kernel_size=2, stride=2, bf16_trans=bf16)
    out = jax.block_until_ready(out)
    assert out.shape == (2, QUBITS, 16, 16)

    ref = reference_forward(np.asarray(x, dtype=np.float64), consts)
    # Error budget on these [0,1] probability-weighted outputs: up to ~1.5e-2 from the
    # default (single-pass bf16, f32-accumulate) MXU precision, plus up to ~5e-3 from
    # bf16 cos/sin on v6e/v7x.  rtol is secondary since |out| <= 1.
    atol = 2.5e-2 if bf16 else 2e-2
    np.testing.assert_allclose(np.asarray(out), ref, rtol=1e-2, atol=atol)
    print("KERNEL_OK")
</pallas_src>

<mosaic_0001>
module attributes {stable_mosaic.version = 11 : i64} {
  func.func @kernel(%arg0: i32, %arg1: memref<4x256xf32, #tpu.memory_space<vmem>>, %arg2: memref<16x4xf32, #tpu.memory_space<vmem>>, %arg3: memref<32x16xf32, #tpu.memory_space<vmem>>, %arg4: memref<32x16xf32, #tpu.memory_space<vmem>>, %arg5: memref<4x16xf32, #tpu.memory_space<vmem>>, %arg6: memref<4x256xf32, #tpu.memory_space<vmem>>) attributes {dimension_semantics = [#tpu.dimension_semantics<parallel>], iteration_bounds = array<i64: 2>, scalar_prefetch = 0 : i64, scratch_operands = 0 : i64, tpu.core_type = #tpu.core_type<tc>, window_params = [{transform_indices = @transform_0, window_bounds = array<i64: 4, 256>}, {pipeline_mode = #tpu.pipeline_mode<synchronous>, transform_indices = @transform_1, window_bounds = array<i64: 16, 4>}, {pipeline_mode = #tpu.pipeline_mode<synchronous>, transform_indices = @transform_2, window_bounds = array<i64: 32, 16>}, {pipeline_mode = #tpu.pipeline_mode<synchronous>, transform_indices = @transform_3, window_bounds = array<i64: 32, 16>}, {pipeline_mode = #tpu.pipeline_mode<synchronous>, transform_indices = @transform_4, window_bounds = array<i64: 4, 16>}, {transform_indices = @transform_5, window_bounds = array<i64: 4, 256>}]} {
    %c0 = arith.constant 0 : index
    %c0_0 = arith.constant 0 : index
    %0 = vector.load %arg1[%c0, %c0_0] : memref<4x256xf32, #tpu.memory_space<vmem>>, vector<4x256xf32>
    %c0_1 = arith.constant 0 : index
    %c0_2 = arith.constant 0 : index
    %1 = vector.load %arg2[%c0_1, %c0_2] : memref<16x4xf32, #tpu.memory_space<vmem>>, vector<16x4xf32>
    %cst = arith.constant dense<0.000000e+00> : vector<16x256xf32>
    %2 = tpu.matmul %1, %0, %cst {dimension_numbers = #tpu.dot_dimension_numbers<[1], [0], [0], [1], [0, 0, 1, 1], [], []>} : vector<16x4xf32>, vector<4x256xf32>, vector<16x256xf32> -> vector<16x256xf32>
    %3 = arith.mulf %0, %0 : vector<4x256xf32>
    %cst_3 = arith.constant dense<0.000000e+00> : vector<256xf32>
    %4 = vector.multi_reduction <add>, %3, %cst_3 [0] : vector<4x256xf32> to vector<256xf32>
    %5 = vector.shape_cast %4 : vector<256xf32> to vector<1x256xf32>
    %cst_4 = arith.constant 2.500000e-01 : f32
    %6 = vector.broadcast %cst_4 : f32 to vector<1x256xf32>
    %7 = arith.mulf %6, %5 : vector<1x256xf32>
    %cst_5 = arith.constant 1.000000e+00 : f32
    %8 = vector.broadcast %cst_5 : f32 to vector<16x256xf32>
    %9 = arith.addf %2, %8 : vector<16x256xf32>
    %10 = arith.mulf %2, %9 : vector<16x256xf32>
    %11 = vector.broadcast %7 : vector<1x256xf32> to vector<16x256xf32>
    %12 = arith.subf %11, %10 : vector<16x256xf32>
    %13 = math.cos %12 : vector<16x256xf32>
    %14 = math.sin %12 : vector<16x256xf32>
    %c0_6 = arith.constant 0 : index
    %c0_7 = arith.constant 0 : index
    %15 = vector.load %arg3[%c0_6, %c0_7] : memref<32x16xf32, #tpu.memory_space<vmem>>, vector<32x16xf32>
    %cst_8 = arith.constant dense<0.000000e+00> : vector<32x256xf32>
    %16 = tpu.matmul %15, %13, %cst_8 {dimension_numbers = #tpu.dot_dimension_numbers<[1], [0], [0], [1], [0, 0, 1, 1], [], []>} : vector<32x16xf32>, vector<16x256xf32>, vector<32x256xf32> -> vector<32x256xf32>
    %c0_9 = arith.constant 0 : index
    %c0_10 = arith.constant 0 : index
    %17 = vector.load %arg4[%c0_9, %c0_10] : memref<32x16xf32, #tpu.memory_space<vmem>>, vector<32x16xf32>
    %cst_11 = arith.constant dense<0.000000e+00> : vector<32x256xf32>
    %18 = tpu.matmul %17, %14, %cst_11 {dimension_numbers = #tpu.dot_dimension_numbers<[1], [0], [0], [1], [0, 0, 1, 1], [], []>} : vector<32x16xf32>, vector<16x256xf32>, vector<32x256xf32> -> vector<32x256xf32>
    %19 = arith.addf %16, %18 : vector<32x256xf32>
    %20 = vector.extract_strided_slice %19 {offsets = [0, 0], sizes = [16, 256], strides = [1, 1]} : vector<32x256xf32> to vector<16x256xf32>
    %21 = vector.extract_strided_slice %19 {offsets = [16, 0], sizes = [16, 256], strides = [1, 1]} : vector<32x256xf32> to vector<16x256xf32>
    %22 = arith.mulf %20, %20 : vector<16x256xf32>
    %23 = arith.mulf %21, %21 : vector<16x256xf32>
    %24 = arith.addf %22, %23 : vector<16x256xf32>
    %c0_12 = arith.constant 0 : index
    %c0_13 = arith.constant 0 : index
    %25 = vector.load %arg5[%c0_12, %c0_13] : memref<4x16xf32, #tpu.memory_space<vmem>>, vector<4x16xf32>
    %cst_14 = arith.constant dense<0.000000e+00> : vector<4x256xf32>
    %26 = tpu.matmul %25, %24, %cst_14 {dimension_numbers = #tpu.dot_dimension_numbers<[1], [0], [0], [1], [0, 0, 1, 1], [], []>} : vector<4x16xf32>, vector<16x256xf32>, vector<4x256xf32> -> vector<4x256xf32>
    %c0_15 = arith.constant 0 : index
    %c0_16 = arith.constant 0 : index
    %27 = vector.load %arg6[%c0_15, %c0_16] : memref<4x256xf32, #tpu.memory_space<vmem>>, vector<4x256xf32>
    tpu.vector_store %arg6[%c0_15, %c0_16], %26 {strides = array<i32>} : memref<4x256xf32, #tpu.memory_space<vmem>>, vector<4x256xf32>,
    return
  }
  func.func @transform_0(%arg0: i32) -> (i32, i32) {
    %c0_i32 = arith.constant 0 : i32
    %c0_i32_0 = arith.constant 0 : i32
    return %c0_i32, %arg0 : i32, i32
  }
  func.func @transform_1(%arg0: i32) -> (i32, i32) {
    %c0_i32 = arith.constant 0 : i32
    %c0_i32_0 = arith.constant 0 : i32
    %c0_i32_1 = arith.constant 0 : i32
    return %c0_i32, %c0_i32_0 : i32, i32
  }
  func.func @transform_2(%arg0: i32) -> (i32, i32) {
    %c0_i32 = arith.constant 0 : i32
    %c0_i32_0 = arith.constant 0 : i32
    %c0_i32_1 = arith.constant 0 : i32
    return %c0_i32, %c0_i32_0 : i32, i32
  }
  func.func @transform_3(%arg0: i32) -> (i32, i32) {
    %c0_i32 = arith.constant 0 : i32
    %c0_i32_0 = arith.constant 0 : i32
    %c0_i32_1 = arith.constant 0 : i32
    return %c0_i32, %c0_i32_0 : i32, i32
  }
  func.func @transform_4(%arg0: i32) -> (i32, i32) {
    %c0_i32 = arith.constant 0 : i32
    %c0_i32_0 = arith.constant 0 : i32
    %c0_i32_1 = arith.constant 0 : i32
    return %c0_i32, %c0_i32_0 : i32, i32
  }
  func.func @transform_5(%arg0: i32) -> (i32, i32) {
    %c0_i32 = arith.constant 0 : i32
    %c0_i32_0 = arith.constant 0 : i32
    return %c0_i32, %arg0 : i32, i32
  }
}

</mosaic_0001>

<bundles_post_ra>
// kernel: tpu_custom_call.1
= control target key start
LH: loop header
LB: loop body
LE: loop exit
PB: predicated region body
PF: predicated region fallthrough
CT: control target
= control target key end

     0   :  { %10 = vsyncpa [#allocation3], 0  ;;  %s2284_s0 = inlined_call_operand.vmem [shape: f32[4,512], index: 0, kind: input, shape index: {}]   ;;  %s2285_s1 = inlined_call_operand.vmem [shape: f32[16,4], index: 1, kind: input, shape index: {}]   ;;  %s2286_s2 = inlined_call_operand.vmem [shape: f32[32,16], index: 2, kind: input, shape index: {}]   ;;  %s2287_s3 = inlined_call_operand.vmem [shape: f32[32,16], index: 3, kind: input, shape index: {}]   ;;  %s2288_s4 = inlined_call_operand.vmem [shape: f32[4,16], index: 4, kind: input, shape index: {}]   ;;  %s2289_s5 = inlined_call_operand.hbm [shape: f32[4,512], index: 5, kind: output, shape index: {}]  }
   0x1   :  { %12 = vsyncpa [#allocation3 + $0x1], 0  ;;  %s1794_s18 = smov 0   ;;  %s1796_s19 = smov 0  }
   0x2   :  { %s1798_s20 = smov 0   ;;  %s1800_s21 = smov 0  }
   0x3 LB: > { %s1815_s22 = sadd.s32 4294967295, %s1754_s21   ;;  %s1557_s23 = sadd.s32 4294967294, %s1754_s21   ;;  %s1754_s21 = sphi %s1800_s21, %s2299_s21   ;;  %s1750_s20 = sphi %s1798_s20, %s2298_s20   ;;  %s1746_s19 = sphi %s1796_s19, %s2297_s19   ;;  %s1742_s18 = sphi %s1794_s18, %s2296_s18  }
   0x4   : > { %s1819_s24 = sadd.s32 1, %s1754_s21   ;;  %s135_s25 = sadd.s32 1, %s1750_s20 }
   0x5   : > { %s132_s26 = ssub.s32 %s1754_s21, %s1819_s24  ;;  %p145_p0 = scmp.ne.s32.totalorder %s1750_s20, %s1746_s19 }
   0x6   : > { %p133_p1 = scmp.eq.s32.totalorder %s132_s26, 0  ;;  %p146_p2 = scmp.eq.s32.totalorder %s1815_s22, 1 }
   0x7   : > { %p151_p3 = scmp.ne.s32.totalorder %s1746_s19, %s1742_s18  ;;  %p152_p4 = scmp.eq.s32.totalorder %s1557_s23, 1 }
   0x8   : > { %s1830_s27 = scalar_select %p133_p1, %s1750_s20, %s135_s25  }
   0x9   : > { %p1832_p5 = por %p146_p2, %p145_p0  ;;  %p1836_p6 = por %p152_p4, %p151_p3 }
   0xa   : > { %p1560_p7 = scmp.ge.s32.totalorder %s1754_s21, 1  ;;  %p191_p8 = scmp.lt.s32.totalorder %s1754_s21, 3 }
   0xc   : > { %p192_p9 = pnand %p1560_p7, %p191_p8 }
   0xd   : > { %s1562_s30 = sshll.u32 (!%p192_p9), %s1815_s22, 1  ;;  %s216_s16 = sand.u32 (!%p192_p9), 1, %s1746_s19  }
   0xe   : > { %195 = sbr.rel (%p192_p9) target bundleno = 798 (0x31e), region = 40  ;;  %p220_p10 = scmp.lt.s32.totalorder (!%p192_p9), %s1562_s30, 3 }
   0xf   : > { %s1561_s17 = sshll.u32 (!%p192_p9), %s216_s16, 3  ;;  %s1614_s23 = sshll.u32 (!%p192_p9), %s1815_s22, 7 }
  0x10   : > { %s218_s25 = scalar_lea.vmem (!%p192_p9), [#allocation2], %s1561_s17  ;;  %s1496_s7 = scalar_lea.hbm (!%p192_p9), %s2289_s5, %s1614_s23 }
  0x11   : > { %s1498_s26 = sshll.u32 (!%p192_p9), %s218_s25, 4  ;;  %s1484_s8 = scalar_lea.sflag (!%p192_p9), [#allocation3], %s216_s16  ;;  %s1499_s26 = int_to_ptr.vmem [resolvable:$true] %s1498_s26 }
  0x12   : > { %s1763_s10 = smov (!%p192_p9), [#allocation2]  }
  0x13   : > { %v1756_v0 = vmov 0.0   ;;  %s2301_s30 = smov (!%p220_p10, %s1562_s30), 3  ;;  %vm238_vm0 = vcmask 1043456   ;;  %v227_v4 = vld [vmem:[%s2285_s1] sm:$0xff]  ;;  %vm231_vm1 = vcmask 31744   ;;  %v228_v8 = vld [vmem:[%s2285_s1 + $0x8] sm:$0xff] }
  0x14   : > { %307 = vmatprep.mubr.f32.mxu0 %v1756_v0  ;;  %1265 = vmatprep.mubr.f32.mxu1 %v1756_v0  ;;  %s1563_s6 = sshll.u32 %s2301_s30, 2  ;;  %s1698_s11 = sshll.u32 %s1763_s10, 4  ;;  %s1699_s11 = int_to_ptr.vmem [resolvable:$false] %s1698_s11 }
  0x15   : > { %s223_s9 = scalar_lea.vmem %s2284_s0, %s1563_s6  ;;  %s1700_s22 = scalar_lea.vmem %s1699_s11, 256 }
  0x16   : > { %v226_v1 = vld [vmem:[%s223_s9] sm:$0xff]  ;;  %s1694_s9 = scalar_lea.vmem %s1499_s26, 128  ;;  %p1701_p0 = scmp.lt.s32.totalorder %s1499_s26, %s1699_s11 }
  0x17   : > { %v230_v2 = vcombine.high %v226_v1, %v226_v1  ;;  %v320_v3 = vmul.f32 %v226_v1, %v226_v1  ;;  %p1695_p11 = scmp.ne.s32.totalorder %s1499_s26, %s1694_s9  ;;  %p1702_p1 = scmp.lt.s32.totalorder %s1700_s22, %s1694_s9 }
  0x19   : > { %1564 = vmatprep.subr.msk.mxu0 %vm238_vm0, %v230_v2  ;;  %v322_v5 = vcombine.high %v320_v3, %v320_v3  ;;  %v324_v6 = vsel %vm238_vm0, %v320_v3, 0.0  ;;  %p1696_p12 = pnand %p1695_p11, %p1832_p5  ;;  %p1703_p2 = por %p1702_p1, %p1701_p0 }
  0x1a   : > { %1565 = vmatpush1.msk.msra.mxu0 %vm238_vm0, %v226_v1  ;;  %v325_v10 = vrot.slane %v324_v6, 4 }
  0x1b   : > { %v331_v7 = vsel %vm238_vm0, %v322_v5, 0.0  ;;  %1566 = vmatmul.mubr.msk.f32.vlgmr.msra.gmra.mxu0 %vm231_vm1, %v227_v4  ;;  %p1697_p13 = pneg %p1696_p12 }
  0x1c   : > { %313 = vmatprep.mubr.f32.mxu0 %v1756_v0  ;;  %v332_v9 = vrot.slane %v331_v7, 4  ;;  %v326_v12 = vadd.f32 %v325_v10, %v324_v6 }
  0x1d   : > { %p1704_p3 = pnand %p1703_p2, %p1697_p13 }
  0x1e   : > { %v333_v11 = vadd.f32 %v332_v9, %v331_v7  ;;  %v327_v14 = vrot.slane %v326_v12, 2  ;;  %v1757_v7 = vmov 683565275   ;;  %v1758_v9 = vmov 2475754826  }
  0x1f   : > { %1567 = vmatmul.mubr.msk.f32.gmra.mxu0 %vm231_vm1, %v228_v8 }
  0x20   : > { %1366 = vmatprep.mubr.f32.mxu0 %v1756_v0  ;;  %v334_v13 = vrot.slane %v333_v11, 2  ;;  %v328_v16 = vadd.f32 %v327_v14, %v326_v12  ;;  %v1759_v12 = vmov 2131351028   ;;  %v1760_v14 = vmov 2102212464  }
  0x22   : > { %v335_v15 = vadd.f32 %v334_v13, %v333_v11  ;;  %v329_v18 = vrot.slane %v328_v16, 1 }
  0x24   : > { %v336_v17 = vrot.slane %v335_v15, 1  ;;  %v330_v22 = vadd.f32 %v329_v18, %v328_v16 }
  0x26   : > { %v337_v19 = vadd.f32 %v336_v17, %v335_v15  ;;  %v338_v30 = vmul.f32 0.25, %v330_v22 }
  0x28   : > { %v339_v23 = vmul.f32 0.25, %v337_v19 }
  0xdb   : > { %v309_v20 = vpop.f32.mrf.mxu0 }
  0xdc   : > { %v340_v28 = vadd.f32 1.0, %v309_v20 }
  0xdd   : > { %v311_v21 = vpop.f32.mrf.mxu0 }
  0xde   : > { %v341_v24 = vadd.f32 1.0, %v311_v21  ;;  %v344_v37 = vmul.f32 %v340_v28, %v309_v20 }
  0xdf   : > { %v315_v25 = vpop.f32.mrf.mxu0 }
  0xe0   : > { %v345_v26 = vmul.f32 %v341_v24, %v311_v21  ;;  %v342_v27 = vadd.f32 1.0, %v315_v25  ;;  %v1865_v44 = vsub.f32 %v338_v30, %v344_v37 }
  0xe1   : > { %v317_v29 = vpop.f32.mrf.mxu0 }
  0xe2   : > { %v1856_v31 = vsub.f32 %v339_v23, %v345_v26  ;;  %v346_v32 = vmul.f32 %v342_v27, %v315_v25  ;;  %v343_v33 = vadd.f32 1.0, %v317_v29  ;;  %v355_v52 = vand.u32 2139095040, %v1865_v44 }
  0xe4   : > { %v458_v34 = vand.u32 2139095040, %v1856_v31  ;;  %v1859_v35 = vsub.f32 %v338_v30, %v346_v32  ;;  %v347_v36 = vmul.f32 %v343_v33, %v317_v29  ;;  %v1880_v60 = vshrl.u32 %v355_v52, 23 }
  0xe5   : > { %v455_v62 = vand.u32 2147483647, %v1856_v31  ;;  %v1762_v30 = vmov 1326507024  }
  0xe6   : > { %v459_v38 = vshrl.u32 %v458_v34, 23  ;;  %v561_v39 = vand.u32 2139095040, %v1859_v35  ;;  %v1862_v40 = vsub.f32 %v339_v23, %v347_v36  ;;  %v558_v49 = vand.u32 2147483647, %v1859_v35 }
  0xe7   : > { %v1761_v23 = vmov 920167782  }
  0xe8   : > { %v1572_v41 = vadd.s32 4294967169, %v459_v38  ;;  %v562_v42 = vshrl.u32 %v561_v39, 23  ;;  %v664_v43 = vand.u32 2139095040, %v1862_v40  ;;  %v661_v45 = vand.u32 2147483647, %v1862_v40 }
  0xe9   : > { %v1876_v56 = vand.u32 8388607, %v558_v49 }
  0xea   : > { %v465_v46 = vadd.s32 1, %v1572_v41  ;;  %v1576_v47 = vadd.s32 4294967169, %v562_v42  ;;  %v665_v48 = vshrl.u32 %v664_v43, 23  ;;  %v668_v50 = vand.u32 8388607, %v661_v45 }
  0xeb   : > { %v566_v3 = vor.u32 8388608, %v1876_v56 }
  0xec   : > { %vm466_vm2 = vcmp.gt.s32.totalorder %v465_v46, 0  ;;  %v568_v51 = vadd.s32 1, %v1576_v47  ;;  %v1580_v53 = vadd.s32 4294967169, %v665_v48  ;;  %v669_v55 = vor.u32 8388608, %v668_v50 }
  0xed   : > { %v1872_v54 = vsel %vm466_vm2, %v465_v46, 0 }
  0xee   : > { %vm569_vm3 = vcmp.gt.s32.totalorder %v568_v51, 0  ;;  %v671_v58 = vadd.s32 1, %v1580_v53  ;;  %v1883_v61 = vand.u32 31, %v1872_v54  ;;  %v1889_v2 = vshll.u32 %v669_v55, 8 }
  0xef   : > { %v570_v57 = vsel %vm569_vm3, %v568_v51, 0 }
  0xf0   : > { %v1878_v59 = vand.u32 31, %v570_v57  ;;  %vm672_vm4 = vcmp.gt.s32.totalorder %v671_v58, 0  ;;  %v1892_v4 = vshrl.u32 %v570_v57, 5 }
  0xf1   : > { %v673_v1 = vsel %vm672_vm4, %v671_v58, 0 }
  0xf2   : > { %v1887_v63 = vsub.s32 32, %v1878_v59  ;;  %v674_v5 = vshrl.u32 %v673_v1, 5  ;;  %v675_v6 = vand.u32 31, %v673_v1  ;;  %v575_v8 = vshll.u32 %v1757_v7, %v1878_v59 }
  0xf3   : > { %v578_v11 = vshll.u32 %v1758_v9, %v1878_v59  ;;  %v581_v13 = vshll.u32 %v1759_v12, %v1878_v59  ;;  %v584_v15 = vshll.u32 %v1760_v14, %v1878_v59  ;;  %vm590_vm9 = vcmp.lt.s32.totalorder %v1892_v4, 1 }
  0xf4   : > { %v576_v10 = vshrl.u32 %v1758_v9, %v1887_v63  ;;  %v676_v16 = vsub.s32 32, %v675_v6  ;;  %v678_v17 = vshll.u32 %v1757_v7, %v675_v6  ;;  %v579_v18 = vshrl.u32 %v1759_v12, %v1887_v63 }
  0xf5   : > { %v582_v19 = vshrl.u32 %v1760_v14, %v1887_v63  ;;  %v681_v20 = vshll.u32 %v1758_v9, %v675_v6  ;;  %v684_v21 = vshll.u32 %v1759_v12, %v675_v6  ;;  %v687_v22 = vshll.u32 %v1760_v14, %v675_v6 }
  0xf6   : > { %v690_v24 = vshll.u32 %v1761_v23, %v675_v6  ;;  %v679_v25 = vshrl.u32 %v1758_v9, %v676_v16  ;;  %v682_v26 = vshrl.u32 %v1759_v12, %v676_v16  ;;  %v685_v27 = vshrl.u32 %v1760_v14, %v676_v16 }
  0xf7   : > { %vm693_vm5 = vcmp.lt.s32.totalorder %v674_v5, 1  ;;  %v677_v28 = vshrl.u32 %v1757_v7, %v676_v16  ;;  %v688_v29 = vshrl.u32 %v1761_v23, %v676_v16  ;;  %v691_v32 = vshrl.u32 %v1762_v30, %v676_v16 }
  0xf8   : > { %vm694_vm6 = vcmp.lt.s32.totalorder %v674_v5, 2  ;;  %v680_v33 = vor.u32 %v679_v25, %v678_v17  ;;  %v683_v34 = vor.u32 %v682_v26, %v681_v20  ;;  %v686_v36 = vor.u32 %v685_v27, %v684_v21 }
  0xf9   : > { %vm695_vm7 = vcmp.lt.s32.totalorder %v674_v5, 3  ;;  %v689_v37 = vor.u32 %v688_v29, %v687_v22  ;;  %v692_v38 = vor.u32 %v691_v32, %v690_v24  ;;  %vm696_vm8 = vcmp.lt.s32.totalorder %v674_v5, 4 }
  0xfa   : > { %v577_v39 = vor.u32 %v576_v10, %v575_v8  ;;  %v697_v41 = vsel %vm693_vm5, %v677_v28, %v680_v33  ;;  %v698_v42 = vsel %vm696_vm8, %v686_v36, 2102212464  ;;  %v701_v43 = vsel %vm693_vm5, %v680_v33, %v683_v34 }
  0xfb   : > { %v705_v46 = vsel %vm693_vm5, %v683_v34, %v686_v36  ;;  %v699_v47 = vsel %vm695_vm7, %v683_v34, %v698_v42  ;;  %v702_v48 = vsel %vm696_vm8, %v689_v37, 920167782  ;;  %v706_v50 = vsel %vm696_vm8, %v692_v38, 1326507024 }
  0xfc   : > { %v585_v51 = vshrl.u32 %v1761_v23, %v1887_v63  ;;  %v703_v52 = vsel %vm695_vm7, %v686_v36, %v702_v48  ;;  %v707_v53 = vsel %vm695_vm7, %v689_v37, %v706_v50  ;;  %v580_v55 = vor.u32 %v579_v18, %v578_v11 }
  0xfd   : > { %v583_v56 = vor.u32 %v582_v19, %v581_v13  ;;  %v700_v57 = vsel %vm694_vm6, %v697_v41, %v699_v47  ;;  %v704_v58 = vsel %vm694_vm6, %v701_v43, %v703_v52  ;;  %v708_v1 = vsel %vm694_vm6, %v705_v46, %v707_v53 }
  0xfe   : > { %v586_v6 = vor.u32 %v585_v51, %v584_v15  ;;  %v1928_v8 = vmul.u32.u64.low %v1889_v2, %v708_v1  ;;  %v1929_v10 = vmul.u32.u64.high %v1889_v2, %v708_v1, %v1928_v8  ;;  %v1937_v20 = vsub.s32 32, %v1883_v61 }
  0xff   : > { %v1932_v16 = vmul.u32.u64.low %v1889_v2, %v704_v58  ;;  %v1933_v17 = vmul.u32.u64.high %v1889_v2, %v704_v58, %v1932_v16  ;;  %v587_v11 = vshll.u32 %v1761_v23, %v1878_v59  ;;  %v588_v5 = vshrl.u32 %v1762_v30, %v1887_v63 }
 0x100   : > { %v606_v13 = vshll.u32 %v566_v3, 8  ;;  %v716_v15 = vmul.u32 %v1889_v2, %v700_v57  ;;  %v574_v18 = vshrl.u32 %v1757_v7, %v1887_v63  ;;  %vm593_vm10 = vcmp.lt.s32.totalorder %v1892_v4, 4 }
 0x101   : > { %v589_v19 = vor.u32 %v588_v5, %v587_v11  ;;  %v595_v21 = vsel %vm593_vm10, %v583_v56, 2102212464  ;;  %v598_v22 = vsel %vm590_vm9, %v577_v39, %v580_v55  ;;  %v599_v24 = vsel %vm593_vm10, %v586_v6, 920167782 }
 0x102   : > { %vm718_vm11 = vc.u32 %v1929_v10, %v1932_v16  ;;  %v719_v59 = vadd.s32 1, %v1933_v17  ;;  %vm592_vm12 = vcmp.lt.s32.totalorder %v1892_v4, 3  ;;  %v602_v3 = vsel %vm590_vm9, %v580_v55, %v583_v56 }
 0x103   : > { %vm591_vm13 = vcmp.lt.s32.totalorder %v1892_v4, 2  ;;  %v594_v2 = vsel %vm590_vm9, %v574_v18, %v577_v39  ;;  %v600_v63 = vsel %vm592_vm12, %v583_v56, %v599_v24  ;;  %v603_v25 = vsel %vm593_vm10, %v589_v19, 1326507024 }
 0x104   : > { %v720_v26 = vsel %vm718_vm11, %v719_v59, %v1933_v17  ;;  %v596_v27 = vsel %vm592_vm12, %v580_v55, %v595_v21  ;;  %v601_v28 = vsel %vm591_vm13, %v598_v22, %v600_v63  ;;  %v604_v29 = vsel %vm592_vm12, %v586_v6, %v603_v25 }
 0x105   : > { %v721_v32 = vadd.s32 %v720_v26, %v716_v15  ;;  %v605_v33 = vsel %vm591_vm13, %v602_v3, %v604_v29  ;;  %v1954_v34 = vmul.u32.u64.low %v606_v13, %v601_v28  ;;  %v1955_v36 = vmul.u32.u64.high %v606_v13, %v601_v28, %v1954_v34 }
 0x106   : > { %v1958_v37 = vmul.u32.u64.low %v606_v13, %v605_v33  ;;  %v1959_v38 = vmul.u32.u64.high %v606_v13, %v605_v33, %v1958_v37  ;;  %v597_v42 = vsel %vm591_vm13, %v594_v2, %v596_v27  ;;  %v1568_v4 = vadd.s32 4294967169, %v1880_v60 }
 0x107   : > { %v722_v41 = vadd.s32 536870912, %v721_v32  ;;  %v1963_v39 = vshrl.u32 %v1872_v54, 5  ;;  %v462_v43 = vand.u32 8388607, %v455_v62  ;;  %v616_v47 = vadd.s32 1, %v1955_v36 }
 0x108   : > { %v482_v48 = vshrl.u32 %v1761_v23, %v1937_v20  ;;  %v485_v50 = vshrl.u32 %v1762_v30, %v1937_v20  ;;  %v613_v51 = vmul.u32 %v606_v13, %v597_v42  ;;  %vm615_vm14 = vc.u32 %v1959_v38, %v1954_v34 }
 0x109   : > { %v1967_v46 = vshrl.u32 %v722_v41, 30  ;;  %v476_v54 = vshrl.u32 %v1759_v12, %v1937_v20  ;;  %v479_v60 = vshrl.u32 %v1760_v14, %v1937_v20  ;;  %v617_v53 = vsel %vm615_vm14, %v616_v47, %v1955_v36 }
 0x10a   : > { %v481_v55 = vshll.u32 %v1760_v14, %v1883_v61  ;;  %v484_v56 = vshll.u32 %v1761_v23, %v1883_v61  ;;  %v618_v57 = vadd.s32 %v617_v53, %v613_v51  ;;  %v473_v58 = vshrl.u32 %v1758_v9, %v1937_v20 }
 0x10b   : > { %v724_v52 = vshll.u32 %v1967_v46, 30  ;;  %v475_v1 = vshll.u32 %v1758_v9, %v1883_v61  ;;  %v478_v6 = vshll.u32 %v1759_v12, %v1883_v61  ;;  %v472_v13 = vshll.u32 %v1757_v7, %v1883_v61 }
 0x10c   : > { %v483_v17 = vor.u32 %v482_v48, %v481_v55  ;;  %v486_v11 = vor.u32 %v485_v50, %v484_v56  ;;  %v619_v5 = vadd.s32 536870912, %v618_v57  ;;  %v362_v19 = vadd.s32 1, %v1568_v4 }
 0x10d   : > { %v725_v8 = vsub.s32 %v721_v32, %v724_v52  ;;  %v477_v15 = vor.u32 %v476_v54, %v475_v1  ;;  %v480_v18 = vor.u32 %v479_v60, %v478_v6  ;;  %v463_v24 = vor.u32 8388608, %v462_v43 }
 0x10e   : > { %v1994_v22 = vshrl.u32 %v619_v5, 30  ;;  %v474_v59 = vor.u32 %v473_v58, %v472_v13  ;;  %vm490_vm15 = vcmp.lt.s32.totalorder %v1963_v39, 4  ;;  %vm487_vm0 = vcmp.lt.s32.totalorder %v1963_v39, 1 }
 0x10f   : > { %v727_v21 = vsub.s32 0, %v725_v8  ;;  %v496_v2 = vsel %vm490_vm15, %v483_v17, 920167782  ;;  %v500_v63 = vsel %vm490_vm15, %v486_v11, 1326507024  ;;  %v499_v25 = vsel %vm487_vm0, %v477_v15, %v480_v18 }
 0x110   : > { %v621_v61 = vshll.u32 %v1994_v22, 30  ;;  %vm363_vm1 = vcmp.gt.s32.totalorder %v362_v19, 0  ;;  %vm488_vm2 = vcmp.lt.s32.totalorder %v1963_v39, 2  ;;  %vm489_vm3 = vcmp.lt.s32.totalorder %v1963_v39, 3 }
 0x111   : > { %v1581_v3 = vmin.u32 %v727_v21, %v725_v8  ;;  %v495_v28 = vsel %vm487_vm0, %v474_v59, %v477_v15  ;;  %v497_v29 = vsel %vm489_vm3, %v480_v18, %v496_v2  ;;  %v501_v32 = vsel %vm489_vm3, %v483_v17, %v500_v63 }
 0x112   : > { %v622_v27 = vsub.s32 %v618_v57, %v621_v61  ;;  %v502_v36 = vsel %vm488_vm2, %v499_v25, %v501_v32  ;;  %v503_v37 = vshll.u32 %v463_v24, 8  ;;  %v364_v41 = vsel %vm363_vm1, %v362_v19, 0 }
 0x113   : > { %v729_v26 = vclz %v1581_v3  ;;  %v471_v4 = vshrl.u32 %v1757_v7, %v1937_v20  ;;  %v492_v43 = vsel %vm490_vm15, %v480_v18, 2102212464  ;;  %v498_v47 = vsel %vm488_vm2, %v495_v28, %v497_v29 }
 0x114   : > { %v624_v42 = vsub.s32 0, %v622_v27  ;;  %v2021_v48 = vmul.u32.u64.low %v503_v37, %v502_v36  ;;  %v2022_v50 = vmul.u32.u64.high %v503_v37, %v502_v36, %v2021_v48  ;;  %v717_v51 = vadd.s32 %v1932_v16, %v1929_v10 }
 0x115   : > { %v1582_v33 = vadd.s32 4294967294, %v729_v26  ;;  %v747_v60 = vsub.s32 4, %v1967_v46  ;;  %v491_v20 = vsel %vm487_vm0, %v471_v4, %v474_v59  ;;  %v493_v56 = vsel %vm489_vm3, %v477_v15, %v492_v43 }
 0x116   : > { %v1577_v52 = vmin.u32 %v624_v42, %v622_v27  ;;  %v2031_v57 = vand.u32 31, %v364_v41  ;;  %v2033_v1 = vmul.u32.u64.low %v503_v37, %v498_v47  ;;  %v2034_v6 = vmul.u32.u64.high %v503_v37, %v498_v47, %v2033_v1 }
 0x117   : > { %vm1583_vm4 = vcmp.lt.s32.totalorder %v1582_v33, 0  ;;  %vm663_vm5 = vcmp.lt.s32.totalorder %v1862_v40, 0  ;;  %v494_v5 = vsel %vm488_vm2, %v491_v20, %v493_v56  ;;  %v352_v13 = vand.u32 2147483647, %v1865_v44 }
 0x118   : > { %v732_v54 = vsel %vm1583_vm4, 0, %v1582_v33  ;;  %v626_v58 = vclz %v1577_v52  ;;  %v748_v19 = vsel %vm663_vm5, %v747_v60, %v1967_v46  ;;  %vm512_vm6 = vc.u32 %v2022_v50, %v2033_v1 }
 0x119   : > { %v733_v53 = vsub.s32 32, %v732_v54  ;;  %v737_v55 = vsub.s32 4294967266, %v732_v54  ;;  %v734_v10 = vshll.u32 %v725_v8, %v732_v54  ;;  %v2047_v8 = vsub.s32 32, %v2031_v57 }
 0x11a   : > { %v1578_v11 = vadd.s32 4294967294, %v626_v58  ;;  %vm2051_vm7 = vcmp.le.f32.partialorder %v661_v45, 0.7853982  ;;  %v513_v39 = vadd.s32 1, %v2034_v6  ;;  %v614_v59 = vadd.s32 %v1954_v34, %v1959_v38 }
 0x11b   : > { %v735_v16 = vshrl.u32 %v717_v51, %v733_v53  ;;  %v738_v17 = vadd.s32 127, %v737_v55  ;;  %v510_v3 = vmul.u32 %v503_v37, %v494_v5  ;;  %v750_v2 = vsel %vm2051_vm7, 0, %v748_v19 }
 0x11c   : > { %vm1579_vm8 = vcmp.lt.s32.totalorder %v1578_v11, 0  ;;  %v514_v25 = vsel %vm512_vm6, %v513_v39, %v2034_v6  ;;  %v2061_v29 = vshrl.u32 %v364_v41, 5  ;;  %v1169_v4 = vadd.s32 3, %v750_v2 }
 0x11d   : > { %v736_v18 = vor.u32 %v735_v16, %v734_v10  ;;  %v739_v15 = vshll.u32 %v738_v17, 23  ;;  %v629_v46 = vsel %vm1579_vm8, 0, %v1578_v11  ;;  %v515_v28 = vadd.s32 %v514_v25, %v510_v3 }
 0x11e   : > { %v630_v63 = vsub.s32 32, %v629_v46  ;;  %v634_v61 = vsub.s32 4294967266, %v629_v46  ;;  %v631_v32 = vshll.u32 %v622_v27, %v629_v46  ;;  %v370_v38 = vshrl.u32 %v1758_v9, %v2047_v8 }
 0x11f   : > { %v740_v24 = vor.u32 4788187, %v739_v15  ;;  %v743_v26 = vcvt.s32.f32 %v736_v18  ;;  %v516_v34 = vadd.s32 536870912, %v515_v28  ;;  %v359_v47 = vand.u32 8388607, %v352_v13 }
 0x120   : > { %v632_v33 = vshrl.u32 %v614_v59, %v630_v63  ;;  %v635_v36 = vadd.s32 127, %v634_v61  ;;  %v379_v48 = vshrl.u32 %v1761_v23, %v2047_v8  ;;  %vm560_vm9 = vcmp.lt.s32.totalorder %v1859_v35, 0 }
 0x121   : > { %v741_v45 = vand.u32 2147483647, %v740_v24  ;;  %v2070_v27 = vshrl.u32 %v516_v34, 30  ;;  %v369_v41 = vshll.u32 %v1757_v7, %v2031_v57  ;;  %v373_v54 = vshrl.u32 %v1759_v12, %v2047_v8 }
 0x122   : > { %v633_v37 = vor.u32 %v632_v33, %v631_v32  ;;  %v636_v43 = vshll.u32 %v635_v36, 23  ;;  %vm2078_vm10 = vcmp.le.f32.partialorder %v558_v49, 0.7853982  ;;  %v372_v53 = vshll.u32 %v1758_v9, %v2031_v57 }
 0x123   : > { %v744_v42 = vmul.f32 %v743_v26, %v741_v45  ;;  %v376_v55 = vshrl.u32 %v1760_v14, %v2047_v8  ;;  %v378_v20 = vshll.u32 %v1760_v14, %v2031_v57  ;;  %v518_v58 = vshll.u32 %v2070_v27, 30 }
 0x124   : > { %v637_v52 = vor.u32 4788187, %v636_v43  ;;  %v371_v6 = vor.u32 %v370_v38, %v369_v41  ;;  %v375_v49 = vshll.u32 %v1759_v12, %v2031_v57  ;;  %v640_v16 = vcvt.s32.f32 %v633_v37 }
 0x125   : > { %v745_v51 = vxor.u32 2147483648, %v744_v42  ;;  %v380_v17 = vor.u32 %v379_v48, %v378_v20  ;;  %v2096_v11 = vsub.s32 %v515_v28, %v518_v58  ;;  %v374_v14 = vor.u32 %v373_v54, %v372_v53 }
 0x126   : > { %v638_v9 = vand.u32 2147483647, %v637_v52  ;;  %v382_v5 = vshrl.u32 %v1762_v30, %v2047_v8  ;;  %v644_v15 = vsub.s32 4, %v1994_v22  ;;  %v377_v19 = vor.u32 %v376_v55, %v375_v49 }
 0x127   : > { %v746_v56 = vsel %vm663_vm5, %v745_v51, %v744_v42  ;;  %v2101_v12 = vand.u32 3, %v750_v2  ;;  %v521_v21 = vsub.s32 0, %v2096_v11  ;;  %v381_v39 = vshll.u32 %v1761_v23, %v2031_v57 }
 0x128   : > { %v749_v10 = vsel %vm2051_vm7, %v1862_v40, %v746_v56  ;;  %v641_v18 = vmul.f32 %v640_v16, %v638_v9  ;;  %vm387_vm11 = vcmp.lt.s32.totalorder %v2061_v29, 4  ;;  %v360_v59 = vor.u32 8388608, %v359_v47 }
 0x129   : > { %1678 = vcosq.f32 %v749_v10  ;;  %vm384_vm12 = vcmp.lt.s32.totalorder %v2061_v29, 1  ;;  %v393_v30 = vsel %vm387_vm11, %v380_v17, 920167782  ;;  %v1573_v46 = vmin.u32 %v521_v21, %v2096_v11 }
 0x12a   : > { %1680 = vsinq.f32 %v749_v10  ;;  %v642_v24 = vxor.u32 2147483648, %v641_v18  ;;  %v383_v3 = vor.u32 %v382_v5, %v381_v39  ;;  %vm386_vm13 = vcmp.lt.s32.totalorder %v2061_v29, 3 }
 0x12b   : > { %v392_v2 = vsel %vm384_vm12, %v371_v6, %v374_v14  ;;  %v1170_v63 = vand.u32 3, %v1169_v4  ;;  %v645_v57 = vsel %vm560_vm9, %v644_v15, %v1994_v22  ;;  %v394_v61 = vsel %vm386_vm13, %v377_v19, %v393_v30 }
 0x12c   : > { %v643_v23 = vsel %vm560_vm9, %v642_v24, %v641_v18  ;;  %v523_v45 = vclz %v1573_v46  ;;  %vm385_vm14 = vcmp.lt.s32.totalorder %v2061_v29, 2  ;;  %v389_v26 = vsel %vm387_vm11, %v377_v19, 2102212464 }
 0x12d   : > { %v646_v25 = vsel %vm2078_vm10, %v1859_v35, %v643_v23  ;;  %v368_v28 = vshrl.u32 %v1757_v7, %v2047_v8  ;;  %v395_v22 = vsel %vm385_vm14, %v392_v2, %v394_v61  ;;  %v396_v32 = vsel %vm384_vm12, %v374_v14, %v377_v19 }
 0x12e   : > { %1682 = vcosq.f32 %v646_v25  ;;  %vm756_vm15 = vcmp.eq.s32.totalorder %v2101_v12, 0  ;;  %v1574_v33 = vadd.s32 4294967294, %v523_v45  ;;  %v397_v36 = vsel %vm387_vm11, %v383_v3, 1326507024 }
 0x12f   : > { %1684 = vsinq.f32 %v646_v25  ;;  %v400_v42 = vshll.u32 %v360_v59, 8  ;;  %vm755_vm0 = vcmp.lt.s32.totalorder %v2101_v12, 2  ;;  %v647_v4 = vsel %vm2078_vm10, 0, %v645_v57 }
 0x130   : > { %v388_v7 = vsel %vm384_vm12, %v368_v28, %v371_v6  ;;  %v390_v8 = vsel %vm386_vm13, %v374_v14, %v389_v26  ;;  %v398_v34 = vsel %vm386_vm13, %v380_v17, %v397_v36  ;;  %vm753_vm1 = vweird.f32 %v1862_v40 }
 0x131   : > { %vm1575_vm2 = vcmp.lt.s32.totalorder %v1574_v33, 0  ;;  %v399_v38 = vsel %vm385_vm14, %v396_v32, %v398_v34  ;;  %v2148_v37 = vmul.u32.u64.low %v400_v42, %v395_v22  ;;  %v2149_v43 = vmul.u32.u64.high %v400_v42, %v395_v22, %v2148_v37 }
 0x132   : > { %vm759_vm3 = vcmp.eq.s32.totalorder %v2101_v12, 2  ;;  %v526_v47 = vsel %vm1575_vm2, 0, %v1574_v33  ;;  %v2153_v48 = vmul.u32.u64.low %v400_v42, %v399_v38  ;;  %v2154_v51 = vmul.u32.u64.high %v400_v42, %v399_v38, %v2153_v48 }
 0x133   : > { %vm1171_vm4 = vcmp.lt.s32.totalorder %v1170_v63, 2  ;;  %v511_v41 = vadd.s32 %v2033_v1, %v2022_v50  ;;  %v527_v54 = vsub.s32 32, %v526_v47  ;;  %v531_v60 = vsub.s32 4294967266, %v526_v47 }
 0x134   : > { %vm1172_vm5 = vcmp.eq.s32.totalorder %v1170_v63, 0  ;;  %v1065_v53 = vadd.s32 3, %v647_v4  ;;  %v528_v55 = vshll.u32 %v2096_v11, %v526_v47  ;;  %v391_v20 = vsel %vm385_vm14, %v388_v7, %v390_v8 }
 0x135   : > { %v529_v6 = vshrl.u32 %v511_v41, %v527_v54  ;;  %v532_v49 = vadd.s32 127, %v531_v60  ;;  %v410_v10 = vadd.s32 1, %v2149_v43  ;;  %vm1175_vm6 = vcmp.eq.s32.totalorder %v1170_v63, 2 }
 0x136   : > { %v1679_v52 = vpop.eup %1678  ;;  %v651_v16 = vand.u32 3, %v647_v4  ;;  %vm409_vm7 = vc.u32 %v2154_v51, %v2148_v37  ;;  %v407_v5 = vmul.u32 %v400_v42, %v391_v20  ;;  %v1066_v21 = vand.u32 3, %v1065_v53 }
 0x137   : > { %v1681_v56 = vpop.eup %1680  ;;  %v760_v58 = vxor.u32 2147483648, %v1679_v52  ;;  %v530_v17 = vor.u32 %v529_v6, %v528_v55  ;;  %v533_v11 = vshll.u32 %v532_v49, 23  ;;  %v411_v18 = vsel %vm409_vm7, %v410_v10, %v2149_v43 }
 0x138   : > { %v757_v9 = vxor.u32 2147483648, %v1681_v56  ;;  %v412_v30 = vadd.s32 %v411_v18, %v407_v5  ;;  %vm650_vm8 = vweird.f32 %v1859_v35  ;;  %vm457_vm9 = vcmp.lt.s32.totalorder %v1856_v31, 0 }
 0x139   : > { %v1177_v50 = vsel %vm1175_vm6, %v760_v58, %v1681_v56  ;;  %v761_v1 = vsel %vm759_vm3, %v760_v58, %v1681_v56  ;;  %v534_v39 = vor.u32 4788187, %v533_v11  ;;  %v537_v2 = vcvt.s32.f32 %v530_v17 }
 0x13a   : > { %v1174_v29 = vsel %vm1172_vm5, %v1679_v52, %v757_v9  ;;  %v758_v14 = vsel %vm756_vm15, %v1679_v52, %v757_v9  ;;  %vm652_vm10 = vcmp.lt.s32.totalorder %v651_v16, 2  ;;  %vm653_vm11 = vcmp.eq.s32.totalorder %v651_v16, 0 }
 0x13b   : > { %v1178_v15 = vsel %vm1171_vm4, %v1174_v29, %v1177_v50  ;;  %v762_v19 = vsel %vm755_vm0, %v758_v14, %v761_v1  ;;  %v1683_v46 = vpop.eup %1682  ;;  %v535_v3 = vand.u32 2147483647, %v534_v39  ;;  %v413_v23 = vadd.s32 536870912, %v412_v30 }
 0x13c   : > { %v1179_v24 = vsel %vm753_vm1, nan, %v1178_v15  ;;  %v763_v59 = vsel %vm753_vm1, nan, %v762_v19  ;;  %v1685_v12 = vpop.eup %1684  ;;  %v657_v63 = vxor.u32 2147483648, %v1683_v46  ;;  %vm656_vm12 = vcmp.eq.s32.totalorder %v651_v16, 2 }
 0x13d   : > { %1229 = vmatprep.subr.mxu1 %v1179_v24  ;;  %1330 = vmatprep.subr.mxu0 %v763_v59  ;;  %v654_v57 = vxor.u32 2147483648, %v1685_v12  ;;  %vm1071_vm13 = vcmp.eq.s32.totalorder %v1066_v21, 2  ;;  %v538_v40 = vmul.f32 %v537_v2, %v535_v3  ;;  %vm1068_vm14 = vcmp.eq.s32.totalorder %v1066_v21, 0 }
 0x13e   : > { %v658_v61 = vsel %vm656_vm12, %v657_v63, %v1685_v12  ;;  %v1073_v25 = vsel %vm1071_vm13, %v657_v63, %v1685_v12  ;;  %v2179_v45 = vshrl.u32 %v413_v23, 30  ;;  %vm1067_vm15 = vcmp.lt.s32.totalorder %v1066_v21, 2 }
 0x13f   : > { %v655_v26 = vsel %vm653_vm11, %v1683_v46, %v654_v57  ;;  %v1070_v28 = vsel %vm1068_vm14, %v1683_v46, %v654_v57  ;;  %v539_v22 = vxor.u32 2147483648, %v538_v40  ;;  %v541_v36 = vsub.s32 4, %v2070_v27 }
 0x140   : > { %v659_v32 = vsel %vm652_vm10, %v655_v26, %v658_v61  ;;  %v1074_v33 = vsel %vm1067_vm15, %v1070_v28, %v1073_v25  ;;  %v415_v42 = vshll.u32 %v2179_v45, 30  ;;  %vm456_vm0 = vcmp.le.f32.partialorder %v455_v62, 0.7853982 }
 0x141   : > { %v660_v4 = vsel %vm650_vm8, nan, %v659_v32  ;;  %v1075_v7 = vsel %vm650_vm8, nan, %v1074_v33  ;;  %v540_v8 = vsel %vm457_vm9, %v539_v22, %v538_v40  ;;  %v542_v43 = vsel %vm457_vm9, %v541_v36, %v2070_v27  ;;  %v1184_v32 = vld [vmem:[%s2287_s3] sm:$0xff] }
 0x142   : > { %1230 = vmatpush1.msra.mxu1 %v1075_v7  ;;  %1331 = vmatpush1.msra.mxu0 %v660_v4  ;;  %v543_v34 = vsel %vm456_vm0, %v1856_v31, %v540_v8  ;;  %v416_v38 = vsub.s32 %v412_v30, %v415_v42  ;;  %v544_v48 = vsel %vm456_vm0, 0, %v542_v43  ;;  %v408_v55 = vadd.s32 %v2148_v37, %v2154_v51  ;;  %v1180_v33 = vld [vmem:[%s2286_s2] sm:$0xff]  ;;  %v1181_v4 = vld [vmem:[%s2286_s2 + $0x8] sm:$0xff]  ;;  %v1186_v7 = vld [vmem:[%s2287_s3 + $0x10] sm:$0xff] }
 0x143   : > { %1686 = vcosq.f32 %v543_v34  ;;  %v961_v54 = vadd.s32 3, %v544_v48  ;;  %v548_v60 = vand.u32 3, %v544_v48  ;;  %vm547_vm8 = vweird.f32 %v1856_v31  ;;  %v1182_v8 = vld [vmem:[%s2286_s2 + $0x10] sm:$0xff] }
 0x144   : > { %1688 = vsinq.f32 %v543_v34  ;;  %v418_v47 = vsub.s32 0, %v416_v38  ;;  %vm354_vm9 = vcmp.lt.s32.totalorder %v1865_v44, 0  ;;  %v438_v59 = vsub.s32 4, %v2179_v45  ;;  %v1187_v34 = vld [vmem:[%s2287_s3 + $0x18] sm:$0xff] }
 0x145   : > { %v962_v53 = vand.u32 3, %v961_v54  ;;  %vm549_vm2 = vcmp.lt.s32.totalorder %v548_v60, 2  ;;  %vm553_vm3 = vcmp.eq.s32.totalorder %v548_v60, 2  ;;  %vm550_vm6 = vcmp.eq.s32.totalorder %v548_v60, 0 }
 0x146   : > { %v1569_v35 = vmin.u32 %v418_v47, %v416_v38  ;;  %vm353_vm10 = vcmp.le.f32.partialorder %v352_v13, 0.7853982  ;;  %v439_v46 = vsel %vm354_vm9, %v438_v59, %v2179_v45  ;;  %v1403_v59 = vld [vmem:[%s2288_s4] sm:$0xf] }
 0x147   : > { %vm967_vm4 = vcmp.eq.s32.totalorder %v962_v53, 2  ;;  %vm964_vm5 = vcmp.eq.s32.totalorder %v962_v53, 0  ;;  %vm963_vm7 = vcmp.lt.s32.totalorder %v962_v53, 2  ;;  %v441_v3 = vsel %vm353_vm10, 0, %v439_v46 }
 0x148   : > { %v420_v41 = vclz %v1569_v35  ;;  %v857_v2 = vadd.s32 3, %v441_v3  ;;  %v445_v63 = vand.u32 3, %v441_v3 }
 0x14a   : > { %v1570_v62 = vadd.s32 4294967294, %v420_v41  ;;  %v858_v12 = vand.u32 3, %v857_v2  ;;  %vm450_vm12 = vcmp.eq.s32.totalorder %v445_v63, 2  ;;  %vm447_vm14 = vcmp.eq.s32.totalorder %v445_v63, 0 }
 0x14b   : > { %vm446_vm0 = vcmp.lt.s32.totalorder %v445_v63, 2 }
 0x14c   : > { %vm1571_vm1 = vcmp.lt.s32.totalorder %v1570_v62, 0  ;;  %vm863_vm11 = vcmp.eq.s32.totalorder %v858_v12, 2  ;;  %vm860_vm13 = vcmp.eq.s32.totalorder %v858_v12, 0  ;;  %vm859_vm15 = vcmp.lt.s32.totalorder %v858_v12, 2 }
 0x14d   : > { %v423_v52 = vsel %vm1571_vm1, 0, %v1570_v62  ;;  %vm444_vm1 = vweird.f32 %v1865_v44 }
 0x14e   : > { %v424_v20 = vsub.s32 32, %v423_v52  ;;  %v428_v56 = vsub.s32 4294967266, %v423_v52  ;;  %v425_v6 = vshll.u32 %v416_v38, %v423_v52  ;;  %v1183_v38 = vld [vmem:[%s2286_s2 + $0x18] sm:$0xff] }
 0x150   : > { %v1687_v58 = vpop.eup %1686  ;;  %v426_v49 = vshrl.u32 %v408_v55, %v424_v20  ;;  %v429_v27 = vadd.s32 127, %v428_v56 }
 0x151   : > { %v1689_v10 = vpop.eup %1688  ;;  %v554_v9 = vxor.u32 2147483648, %v1687_v58 }
 0x152   : > { %v551_v16 = vxor.u32 2147483648, %v1689_v10  ;;  %v427_v50 = vor.u32 %v426_v49, %v425_v6  ;;  %v430_v1 = vshll.u32 %v429_v27, 23 }
 0x153   : > { %v969_v17 = vsel %vm967_vm4, %v554_v9, %v1689_v10  ;;  %v555_v11 = vsel %vm553_vm3, %v554_v9, %v1689_v10 }
 0x154   : > { %v966_v37 = vsel %vm964_vm5, %v1687_v58, %v551_v16  ;;  %v552_v51 = vsel %vm550_vm6, %v1687_v58, %v551_v16  ;;  %v431_v29 = vor.u32 4788187, %v430_v1  ;;  %v434_v21 = vcvt.s32.f32 %v427_v50 }
 0x155   : > { %v970_v14 = vsel %vm963_vm7, %v966_v37, %v969_v17  ;;  %v556_v5 = vsel %vm549_vm2, %v552_v51, %v555_v11  ;;  %vm1188_vm2 = vcmask 130048  }
 0x156   : > { %v971_v18 = vsel %vm547_vm8, nan, %v970_v14  ;;  %v557_v15 = vsel %vm547_vm8, nan, %v556_v5  ;;  %v432_v19 = vand.u32 2147483647, %v431_v29 }
 0x157   : > { %1231 = vmatprep.subr.mxu1 %v971_v18  ;;  %1332 = vmatprep.subr.mxu0 %v557_v15 }
 0x158   : > { %v435_v39 = vmul.f32 %v434_v21, %v432_v19 }
 0x15a   : > { %v436_v24 = vxor.u32 2147483648, %v435_v39 }
 0x15c   : > { %v437_v30 = vsel %vm354_vm9, %v436_v24, %v435_v39 }
 0x15d   : > { %v440_v31 = vsel %vm353_vm10, %v1865_v44, %v437_v30  ;;  %v1185_v44 = vld [vmem:[%s2287_s3 + $0x8] sm:$0xff] }
 0x15e   : > { %1690 = vcosq.f32 %v440_v31 }
 0x15f   : > { %1692 = vsinq.f32 %v440_v31 }
 0x16b   : > { %v1691_v23 = vpop.eup %1690 }
 0x16c   : > { %v1693_v57 = vpop.eup %1692  ;;  %v451_v40 = vxor.u32 2147483648, %v1691_v23 }
 0x16d   : > { %v448_v61 = vxor.u32 2147483648, %v1693_v57 }
 0x16e   : > { %v865_v25 = vsel %vm863_vm11, %v451_v40, %v1693_v57  ;;  %v452_v13 = vsel %vm450_vm12, %v451_v40, %v1693_v57 }
 0x16f   : > { %v862_v26 = vsel %vm860_vm13, %v1691_v23, %v448_v61  ;;  %v449_v28 = vsel %vm447_vm14, %v1691_v23, %v448_v61 }
 0x170   : > { %v866_v45 = vsel %vm859_vm15, %v862_v26, %v865_v25  ;;  %v453_v22 = vsel %vm446_vm0, %v449_v28, %v452_v13 }
 0x171   : > { %v867_v36 = vsel %vm444_vm1, nan, %v866_v45  ;;  %v454_v42 = vsel %vm444_vm1, nan, %v453_v22 }
 0x172   : > { %1232 = vmatpush1.msra.mxu1 %v867_v36  ;;  %1333 = vmatpush1.msra.mxu0 %v454_v42 }
 0x173   : > { %1600 = vmatmul.mubr.msk.f32.vlgmr.msra.gmra.mxu1 %vm1188_vm2, %v1184_v32  ;;  %1604 = vmatmul.mubr.msk.f32.vlgmr.msra.gmra.mxu0 %vm1188_vm2, %v1180_v33 }
 0x174   : > { %1271 = vmatprep.mubr.f32.mxu1 %v1756_v0  ;;  %1372 = vmatprep.mubr.f32.mxu0 %v1756_v0 }
 0x177   : > { %1601 = vmatmul.mubr.msk.f32.gmra.mxu1 %vm1188_vm2, %v1185_v44  ;;  %1605 = vmatmul.mubr.msk.f32.gmra.mxu0 %vm1188_vm2, %v1181_v4 }
 0x178   : > { %1277 = vmatprep.mubr.f32.mxu1 %v1756_v0  ;;  %1378 = vmatprep.mubr.f32.mxu0 %v1756_v0 }
 0x17b   : > { %1602 = vmatmul.mubr.msk.f32.gmra.mxu1 %vm1188_vm2, %v1186_v7  ;;  %1606 = vmatmul.mubr.msk.f32.gmra.mxu0 %vm1188_vm2, %v1182_v8 }
 0x17c   : > { %1283 = vmatprep.mubr.f32.mxu1 %v1756_v0  ;;  %1384 = vmatprep.mubr.f32.mxu0 %v1756_v0 }
 0x17f   : > { %1603 = vmatmul.mubr.msk.f32.gmra.mxu1 %vm1188_vm2, %v1187_v34  ;;  %1607 = vmatmul.mubr.msk.f32.gmra.mxu0 %vm1188_vm2, %v1183_v38 }
 0x180   : > { %1471 = vmatprep.mubr.f32.mxu1 %v1756_v0 }
 0x233   : > { %v1267_v43 = vpop.f32.mrf.mxu1  ;;  %v1368_v47 = vpop.f32.mrf.mxu0 }
 0x234   : > { %v1369_v17 = vadd.f32 %v1368_v47, %v1267_v43 }
 0x235   : > { %v1269_v35 = vpop.f32.mrf.mxu1  ;;  %v1370_v48 = vpop.f32.mrf.mxu0 }
 0x236   : > { %v1371_v50 = vadd.f32 %v1370_v48, %v1269_v35  ;;  %v1391_v19 = vmul.f32 %v1369_v17, %v1369_v17 }
 0x237   : > { %v1273_v41 = vpop.f32.mrf.mxu1  ;;  %v1374_v54 = vpop.f32.mrf.mxu0 }
 0x238   : > { %v1375_v10 = vadd.f32 %v1374_v54, %v1273_v41  ;;  %v1392_v18 = vmul.f32 %v1371_v50, %v1371_v50 }
 0x239   : > { %v1275_v62 = vpop.f32.mrf.mxu1  ;;  %v1376_v60 = vpop.f32.mrf.mxu0 }
 0x23a   : > { %v1377_v6 = vadd.f32 %v1376_v60, %v1275_v62  ;;  %v1393_v14 = vmul.f32 %v1375_v10, %v1375_v10 }
 0x23b   : > { %v1279_v52 = vpop.f32.mrf.mxu1  ;;  %v1380_v53 = vpop.f32.mrf.mxu0 }
 0x23c   : > { %v1381_v9 = vadd.f32 %v1380_v53, %v1279_v52  ;;  %v1394_v37 = vmul.f32 %v1377_v6, %v1377_v6 }
 0x23d   : > { %v1281_v55 = vpop.f32.mrf.mxu1  ;;  %v1382_v20 = vpop.f32.mrf.mxu0 }
 0x23e   : > { %v1383_v49 = vadd.f32 %v1382_v20, %v1281_v55  ;;  %v1395_v5 = vmul.f32 %v1381_v9, %v1381_v9 }
 0x23f   : > { %v1285_v56 = vpop.f32.mrf.mxu1  ;;  %v1386_v58 = vpop.f32.mrf.mxu0 }
 0x240   : > { %v1387_v27 = vadd.f32 %v1386_v58, %v1285_v56  ;;  %v1396_v51 = vmul.f32 %v1383_v49, %v1383_v49  ;;  %v1399_v24 = vadd.f32 %v1395_v5, %v1391_v19 }
 0x241   : > { %v1287_v0 = vpop.f32.mrf.mxu1  ;;  %v1388_v16 = vpop.f32.mrf.mxu0 }
 0x242   : > { %v1389_v1 = vadd.f32 %v1388_v16, %v1287_v0  ;;  %v1397_v11 = vmul.f32 %v1387_v27, %v1387_v27  ;;  %v1400_v39 = vadd.f32 %v1396_v51, %v1392_v18 }
 0x244   : > { %v1398_v29 = vmul.f32 %v1389_v1, %v1389_v1  ;;  %v1401_v21 = vadd.f32 %v1397_v11, %v1393_v14 }
 0x246   : > { %v1402_v15 = vadd.f32 %v1398_v29, %v1394_v37 }
 0x248   : > { %1435 = vmatprep.subr.mxu1 %v1402_v15 }
 0x249   : > { %1436 = vmatpush1.msra.mxu1 %v1401_v21 }
 0x24a   : > { %1437 = vmatprep.subr.mxu1 %v1400_v39 }
 0x24b   : > { %1438 = vmatpush1.msra.mxu1 %v1399_v24 }
 0x24c   : > { %1608 = vmatmul.mubr.msk.f32.vlgmr.msra.gmra.mxu1 %vm1188_vm2, %v1403_v59 }
 0x30c   : > { %v1473_v30 = vpop.f32.mrf.mxu1 }
 0x30e   : > { %v1475_v31 = vpop.f32.mrf.mxu1 }
 0x30f   : > { %v1480_v46 = vcombine.low %v1473_v30, %v1475_v31 }
 0x311   : > { %1482 = vst [vmem:[%s218_s25] sm:$0xff] %v1480_v46 }
 0x312   : > { %1707 = shalt.err (!%p1704_p3)
}
 0x313   : > { %s1708_s12 = scalar_lea.hbm %s1496_s7, 128  ;;  %s1712_s15 = scalar_lea.hbm %s2289_s5, 256 }
 0x314   : > { %p1709_p4 = scmp.ne.s32.totalorder %s1496_s7, %s1708_s12  ;;  %p1713_p9 = scmp.lt.s32.totalorder %s1496_s7, %s2289_s5 }
 0x315   : > { %p1714_p10 = scmp.lt.s32.totalorder %s1712_s15, %s1708_s12 }
 0x316   : > { %p1710_p7 = pnand %p1709_p4, %p1832_p5 }
 0x317   : > { %p1715_p11 = por %p1714_p10, %p1713_p9 }
 0x318   : > { %p1711_p8 = pneg %p1710_p7 }
 0x31a   : > { %p1716_p12 = pnand %p1715_p11, %p1711_p8 }
 0x31c   : > { %1719 = shalt.err (!%p1716_p12)
}
 0x31d   : > { %1631 = dma.vmem_to_hbm [thread:$0]  (%p1832_p5), %s1499_s26, 128, %s1496_s7, %s1484_s8  }
 0x31e PF: > { %p1637_p13 = scmp.ge.s32.totalorder %s1754_s21, 2  ;;  %s1510_s23 = sand.u32 1, %s1742_s18  }
 0x31f   : > { %s1511_s25 = scalar_lea.sflag [#allocation3], %s1510_s23 }
 0x320   : > { %p1634_p0 = pnand %p1637_p13, %p1836_p6 }
 0x322   : > { %p1635_p1 = pneg %p1634_p0 }
 0x324   : > { %1737 = dma.done.wait (%p1635_p1), %s1511_s25, 128  }
 0x325   : > { %1739 = vsyncadd (%p1635_p1), %s1511_s25, 4294967168  ;;  %p15_p2 = scmp.ge.s32.totalorder %s1819_s24, 4   ;;  %s2296_s18 = smov %s1746_s19 }
 0x326   : > { %s2297_s19 = smov %s1750_s20  ;;  %s2298_s20 = smov %s1830_s27 }
 0x327   : > { %s2299_s21 = smov %s1819_s24  ;;  %17 = sbr.rel (!%p15_p2) target bundleno = 3 (0x3), region = 75 }
 0x32c   :  { %1516 = vsyncpa [#allocation3], 1 }
 0x32d   :  { %1518 = vsyncpa [#allocation3 + $0x1], 1 }

</bundles_post_ra>
